<compile_context>
chip_gen: v7x
topology: tpu7x:2x2x1
jax: 0.10.0
libtpu: 0.0.40
codegen_flags: <defaults>
</compile_context>

<pallas_src>
import functools

import jax
import jax.numpy as jnp
from jax.experimental import pallas as pl
from jax.experimental.pallas import tpu as pltpu

LANES = 128
TARGET_BLOCK_BYTES = 4 * 1024 * 1024     # per input, per pipeline buffer
VMEM_LIMIT_BYTES = 32 * 1024 * 1024      # 2 inputs x 2 bufs x 4 MiB = 16 MiB + slack


def _num_tensorcores() -> int:
    """Best-effort TensorCores-per-chip (2 on v7x, 1 on v5e/v6e); default 1."""
    try:
        info = pltpu.get_tpu_info()
    except Exception:
        return 1
    for attr in ("tensorcores_per_chip", "num_tensorcores", "cores_per_chip",
                 "num_cores", "core_count"):
        val = getattr(info, attr, None)
        if isinstance(val, int) and val == 2:
            return 2
    return 1


def _masked_sums_jax(x, t):
    """Plain-JAX (sum(se*mask), sum(mask)) for the tiny ragged tail."""
    xf = x.astype(jnp.float32)
    tf = t.astype(jnp.float32)
    ax = jnp.abs(xf)
    at = jnp.abs(tf)
    m = (ax > 0.0) & (ax <= 1.0) & (at > 0.0) & (at <= 1.0)
    d = xf - tf
    return (jnp.sum(jnp.where(m, d * d, 0.0)),
            jnp.sum(m.astype(jnp.float32)))


def _mask_mse_kernel(x_ref, t_ref, sse_ref, cnt_ref, *,
                     blocks_per_split, partial_rows):
    c = pl.program_id(0)          # core-split axis (CORE_PARALLEL when used)
    i = pl.program_id(1)          # reduction axis ("arbitrary")

    # Resident (8, 128) accumulators (the output blocks): zero at the start of
    # each core's sweep.
    @pl.when(i == 0)
    def _():
        sse_ref[...] = jnp.zeros_like(sse_ref)
        cnt_ref[...] = jnp.zeros_like(cnt_ref)

    x = x_ref[...].astype(jnp.float32)
    t = t_ref[...].astype(jnp.float32)
    block_rows = x.shape[0]

    ax = jnp.abs(x)
    at = jnp.abs(t)
    diff = x - t
    se = diff * diff
    # (v != 0) & (|v| <= 1)  <=>  (|v| > 0) & (|v| <= 1); |v| computed once.
    m = (ax > 0.0) & (ax <= 1.0) & (at > 0.0) & (at <= 1.0)

    def accumulate(mask):
        # jnp.where (not se * maskf) so inf/NaN squared errors at masked-out
        # elements never leak into the sum — matches torch's mse[mask].mean().
        sse_ref[...] += jnp.where(mask, se, 0.0).reshape(-1, 8, LANES).sum(axis=0)
        cnt_ref[...] += mask.astype(jnp.float32).reshape(-1, 8, LANES).sum(axis=0)

    if partial_rows == 0:
        # Common case: grid tiles the input exactly — zero row-validity work.
        accumulate(m)
    else:
        # Only the single, statically known partial last block pays for a row
        # mask; its out-of-range rows contain unspecified data.
        is_last = jnp.logical_and(c == pl.num_programs(0) - 1,
                                  i == blocks_per_split - 1)

        @pl.when(jnp.logical_not(is_last))
        def _():
            accumulate(m)

        @pl.when(is_last)
        def _():
            row_ids = jax.lax.broadcasted_iota(jnp.int32, (block_rows, 1), 0)
            accumulate(m & (row_ids < partial_rows))


@jax.jit
def mask_mse(inputs, targets):
    """Masked MSE over all elements (any shape); returns a float32 scalar."""
    assert inputs.shape == targets.shape

    x = inputs.reshape(-1)
    t = targets.reshape(-1)
    n = x.shape[0]

    itemsize = jnp.dtype(inputs.dtype).itemsize
    sub = max(8, 32 // itemsize)              # min sublane tile: f32->8, bf16->16, 8-bit->32
    tile_elems = sub * LANES
    main_elems = (n // tile_elems) * tile_elems   # bulk handled by the kernel
    rows = main_elems // LANES                    # static, multiple of `sub`

    sse = jnp.float32(0.0)
    cnt = jnp.float32(0.0)

    if main_elems:
        x2 = x[:main_elems].reshape(rows, LANES)
        t2 = t[:main_elems].reshape(rows, LANES)

        block_rows = min(TARGET_BLOCK_BYTES // (LANES * itemsize), rows)
        num_blocks = (rows + block_rows - 1) // block_rows
        partial_rows = rows % block_rows          # rows in the final block; 0 == full

        ncores = _num_tensorcores()
        splits = ncores if (ncores > 1 and num_blocks % ncores == 0) else 1
        blocks_per_split = num_blocks // splits

        def in_index_map(c, i):
            return (c * blocks_per_split + i, 0)

        kernel = functools.partial(
            _mask_mse_kernel,
            blocks_per_split=blocks_per_split,
            partial_rows=partial_rows,
        )

        sse_part, cnt_part = pl.pallas_call(
            kernel,
            out_shape=(
                jax.ShapeDtypeStruct((splits * 8, LANES), jnp.float32),
                jax.ShapeDtypeStruct((splits * 8, LANES), jnp.float32),
            ),
            grid=(splits, blocks_per_split),
            in_specs=[
                pl.BlockSpec((block_rows, LANES), in_index_map),
                pl.BlockSpec((block_rows, LANES), in_index_map),
            ],
            out_specs=(
                pl.BlockSpec((8, LANES), lambda c, i: (c, 0)),
                pl.BlockSpec((8, LANES), lambda c, i: (c, 0)),
            ),
            compiler_params=pltpu.CompilerParams(
                dimension_semantics=(
                    pltpu.CORE_PARALLEL if splits > 1 else pltpu.ARBITRARY,
                    pltpu.ARBITRARY,
                ),
                vmem_limit_bytes=VMEM_LIMIT_BYTES,
            ),
            cost_estimate=pl.CostEstimate(
                flops=15 * main_elems,
                transcendentals=0,
                bytes_accessed=2 * main_elems * itemsize + 2 * splits * 8 * LANES * 4,
            ),
        )(x2, t2)

        # Per-lane accumulators stay far below 2^24 counts for typical flow
        # tensors; multi-billion-element inputs would need a wider reduction.
        sse = sse + jnp.sum(sse_part)
        cnt = cnt + jnp.sum(cnt_part)

    if main_elems < n:
        # Sub-tile ragged tail (< sub*128 elements): fold in with plain JAX
        # instead of jnp.pad-ing (and re-reading) the whole inputs.
        tail_sse, tail_cnt = _masked_sums_jax(x[main_elems:], t[main_elems:])
        sse = sse + tail_sse
        cnt = cnt + tail_cnt

    # mse[mask].mean() == masked sum / masked count (NaN if count == 0,
    # matching torch's empty-tensor mean).
    return (sse / cnt).astype(jnp.float32)


def _reference(inputs, targets):
    x = inputs.astype(jnp.float32)
    t = targets.astype(jnp.float32)
    se = (x - t) ** 2
    mask = (x != 0.0) & (t != 0.0) & (jnp.abs(x) <= 1.0) & (jnp.abs(t) <= 1.0)
    maskf = mask.astype(jnp.float32)
    return jnp.sum(se * maskf) / jnp.sum(maskf)


def _make_inputs(shape, seed):
    k1, k2, k3 = jax.random.split(jax.random.PRNGKey(seed), 3)
    # Flow-like values roughly in [-1.2, 1.2] so some elements fall outside
    # [-1, 1]; also inject exact zeros (grid_sample zero padding).
    inp = jax.random.uniform(k1, shape, jnp.float32, minval=-1.2, maxval=1.2)
    tgt = jax.random.uniform(k2, shape, jnp.float32, minval=-1.2, maxval=1.2)
    zero_mask = jax.random.bernoulli(k3, 0.1, shape)
    inp = jnp.where(zero_mask, 0.0, inp)
    return inp, tgt


if __name__ == "__main__":
    # Primary (small, module-typical) case: NCHW flow tensor.
    inp, tgt = _make_inputs((2, 4, 16, 16), seed=0)
    out = jax.block_until_ready(mask_mse(inp, tgt))
    ref = _reference(inp, tgt)
    assert jnp.allclose(out, ref, rtol=1e-5, atol=1e-6), (out, ref)

    # Ragged sub-tile tail case (numel not a multiple of 8*128).
    inp2, tgt2 = _make_inputs((2, 4, 15, 17), seed=1)
    out2 = jax.block_until_ready(mask_mse(inp2, tgt2))
    ref2 = _reference(inp2, tgt2)
    assert jnp.allclose(out2, ref2, rtol=1e-5, atol=1e-6), (out2, ref2)

    # Partial-last-block case (rows not a multiple of block_rows).
    inp3, tgt3 = _make_inputs((1, 2, 1026, 512), seed=2)
    out3 = jax.block_until_ready(mask_mse(inp3, tgt3))
    ref3 = _reference(inp3, tgt3)
    assert jnp.allclose(out3, ref3, rtol=1e-4, atol=1e-6), (out3, ref3)

    print("KERNEL_OK")
</pallas_src>

<mosaic_0001>
module attributes {stable_mosaic.version = 11 : i64} {
  func.func @_mask_mse_kernel(%arg0: i32, %arg1: i32, %arg2: memref<16x128xf32, #tpu.memory_space<vmem>>, %arg3: memref<16x128xf32, #tpu.memory_space<vmem>>, %arg4: memref<8x128xf32, #tpu.memory_space<vmem>>, %arg5: memref<8x128xf32, #tpu.memory_space<vmem>>) attributes {dimension_semantics = [#tpu.dimension_semantics<arbitrary>, #tpu.dimension_semantics<arbitrary>], iteration_bounds = array<i64: 1, 1>, scalar_prefetch = 0 : i64, scratch_operands = 0 : i64, tpu.core_type = #tpu.core_type<tc>, window_params = [{transform_indices = @transform_0, window_bounds = array<i64: 16, 128>}, {transform_indices = @transform_1, window_bounds = array<i64: 16, 128>}, {transform_indices = @transform_2, window_bounds = array<i64: 8, 128>}, {transform_indices = @transform_3, window_bounds = array<i64: 8, 128>}]} {
    %c0_i32 = arith.constant 0 : i32
    %0 = arith.cmpi eq, %arg1, %c0_i32 : i32
    %1 = arith.extui %0 : i1 to i32
    %c0_i32_0 = arith.constant 0 : i32
    %2 = arith.cmpi ne, %1, %c0_i32_0 : i32
    scf.if %2 {
      %cst_18 = arith.constant 0.000000e+00 : f32
      %34 = vector.broadcast %cst_18 : f32 to vector<8x128xf32>
      %c0_19 = arith.constant 0 : index
      %c0_20 = arith.constant 0 : index
      %35 = vector.load %arg4[%c0_19, %c0_20] : memref<8x128xf32, #tpu.memory_space<vmem>>, vector<8x128xf32>
      tpu.vector_store %arg4[%c0_19, %c0_20], %34 {strides = array<i32>} : memref<8x128xf32, #tpu.memory_space<vmem>>, vector<8x128xf32>,
      %cst_21 = arith.constant 0.000000e+00 : f32
      %36 = vector.broadcast %cst_21 : f32 to vector<8x128xf32>
      %c0_22 = arith.constant 0 : index
      %c0_23 = arith.constant 0 : index
      %37 = vector.load %arg5[%c0_22, %c0_23] : memref<8x128xf32, #tpu.memory_space<vmem>>, vector<8x128xf32>
      tpu.vector_store %arg5[%c0_22, %c0_23], %36 {strides = array<i32>} : memref<8x128xf32, #tpu.memory_space<vmem>>, vector<8x128xf32>,
    } else {
    }
    %c0 = arith.constant 0 : index
    %c0_1 = arith.constant 0 : index
    %3 = vector.load %arg2[%c0, %c0_1] : memref<16x128xf32, #tpu.memory_space<vmem>>, vector<16x128xf32>
    %c0_2 = arith.constant 0 : index
    %c0_3 = arith.constant 0 : index
    %4 = vector.load %arg3[%c0_2, %c0_3] : memref<16x128xf32, #tpu.memory_space<vmem>>, vector<16x128xf32>
    %5 = math.absf %3 : vector<16x128xf32>
    %6 = math.absf %4 : vector<16x128xf32>
    %7 = arith.subf %3, %4 : vector<16x128xf32>
    %8 = arith.mulf %7, %7 : vector<16x128xf32>
    %cst = arith.constant 0.000000e+00 : f32
    %9 = vector.broadcast %cst : f32 to vector<16x128xf32>
    %10 = arith.cmpf ogt, %5, %9 : vector<16x128xf32>
    %cst_4 = arith.constant 1.000000e+00 : f32
    %11 = vector.broadcast %cst_4 : f32 to vector<16x128xf32>
    %12 = arith.cmpf ole, %5, %11 : vector<16x128xf32>
    %13 = arith.andi %10, %12 : vector<16x128xi1>
    %cst_5 = arith.constant 0.000000e+00 : f32
    %14 = vector.broadcast %cst_5 : f32 to vector<16x128xf32>
    %15 = arith.cmpf ogt, %6, %14 : vector<16x128xf32>
    %16 = arith.andi %13, %15 : vector<16x128xi1>
    %cst_6 = arith.constant 1.000000e+00 : f32
    %17 = vector.broadcast %cst_6 : f32 to vector<16x128xf32>
    %18 = arith.cmpf ole, %6, %17 : vector<16x128xf32>
    %19 = arith.andi %16, %18 : vector<16x128xi1>
    %c0_7 = arith.constant 0 : index
    %c0_8 = arith.constant 0 : index
    %20 = vector.load %arg4[%c0_7, %c0_8] : memref<8x128xf32, #tpu.memory_space<vmem>>, vector<8x128xf32>
    %cst_9 = arith.constant 0.000000e+00 : f32
    %21 = vector.broadcast %cst_9 : f32 to vector<16x128xf32>
    %22 = arith.select %19, %8, %21 : vector<16x128xi1>, vector<16x128xf32>
    %23 = vector.shape_cast %22 : vector<16x128xf32> to vector<2x8x128xf32>
    %cst_10 = arith.constant dense<0.000000e+00> : vector<8x128xf32>
    %24 = vector.multi_reduction <add>, %23, %cst_10 [0] : vector<2x8x128xf32> to vector<8x128xf32>
    %25 = arith.addf %20, %24 : vector<8x128xf32>
    %c0_11 = arith.constant 0 : index
    %c0_12 = arith.constant 0 : index
    %26 = vector.load %arg4[%c0_11, %c0_12] : memref<8x128xf32, #tpu.memory_space<vmem>>, vector<8x128xf32>
    tpu.vector_store %arg4[%c0_11, %c0_12], %25 {strides = array<i32>} : memref<8x128xf32, #tpu.memory_space<vmem>>, vector<8x128xf32>,
    %c0_13 = arith.constant 0 : index
    %c0_14 = arith.constant 0 : index
    %27 = vector.load %arg5[%c0_13, %c0_14] : memref<8x128xf32, #tpu.memory_space<vmem>>, vector<8x128xf32>
    %28 = arith.extui %19 : vector<16x128xi1> to vector<16x128xi32>
    %29 = arith.sitofp %28 : vector<16x128xi32> to vector<16x128xf32>
    %30 = vector.shape_cast %29 : vector<16x128xf32> to vector<2x8x128xf32>
    %cst_15 = arith.constant dense<0.000000e+00> : vector<8x128xf32>
    %31 = vector.multi_reduction <add>, %30, %cst_15 [0] : vector<2x8x128xf32> to vector<8x128xf32>
    %32 = arith.addf %27, %31 : vector<8x128xf32>
    %c0_16 = arith.constant 0 : index
    %c0_17 = arith.constant 0 : index
    %33 = vector.load %arg5[%c0_16, %c0_17] : memref<8x128xf32, #tpu.memory_space<vmem>>, vector<8x128xf32>
    tpu.vector_store %arg5[%c0_16, %c0_17], %32 {strides = array<i32>} : memref<8x128xf32, #tpu.memory_space<vmem>>, vector<8x128xf32>,
    return
  }
  func.func @transform_0(%arg0: i32, %arg1: i32) -> (i32, i32) {
    %c1_i32 = arith.constant 1 : i32
    %0 = arith.muli %arg0, %c1_i32 : i32
    %1 = arith.addi %0, %arg1 : i32
    %c0_i32 = arith.constant 0 : i32
    %c0_i32_0 = arith.constant 0 : i32
    return %1, %c0_i32 : i32, i32
  }
  func.func @transform_1(%arg0: i32, %arg1: i32) -> (i32, i32) {
    %c1_i32 = arith.constant 1 : i32
    %0 = arith.muli %arg0, %c1_i32 : i32
    %1 = arith.addi %0, %arg1 : i32
    %c0_i32 = arith.constant 0 : i32
    %c0_i32_0 = arith.constant 0 : i32
    return %1, %c0_i32 : i32, i32
  }
  func.func @transform_2(%arg0: i32, %arg1: i32) -> (i32, i32) {
    %c0_i32 = arith.constant 0 : i32
    %c0_i32_0 = arith.constant 0 : i32
    return %arg0, %c0_i32 : i32, i32
  }
  func.func @transform_3(%arg0: i32, %arg1: i32) -> (i32, i32) {
    %c0_i32 = arith.constant 0 : i32
    %c0_i32_0 = arith.constant 0 : i32
    return %arg0, %c0_i32 : i32, i32
  }
}

</mosaic_0001>

<bundles_post_ra>
// kernel: mask_mse.1
= control target key start
LH: loop header
LB: loop body
LE: loop exit
PB: predicated region body
PF: predicated region fallthrough
CT: control target
= control target key end

     0   :  { %v126_v13 = vmov 0.0   ;;  %s165_s0 = inlined_call_operand.vmem [shape: f32[16,128], index: 0, kind: input, shape index: {}]   ;;  %s166_s1 = inlined_call_operand.vmem [shape: f32[16,128], index: 1, kind: input, shape index: {}]   ;;  %s167_s2 = inlined_call_operand.vmem [shape: f32[8,128], index: 2, kind: output, shape index: {0}]   ;;  %s168_s3 = inlined_call_operand.vmem [shape: f32[8,128], index: 3, kind: output, shape index: {1}]  }
   0x1   :  { %v63_v0 = vld [vmem:[%s165_s0] sm:$0xff]  ;;  %v64_v1 = vld [vmem:[%s165_s0 + $0x8] sm:$0xff] }
   0x2   :  { %v65_v2 = vld [vmem:[%s166_s1] sm:$0xff]  ;;  %v66_v3 = vld [vmem:[%s166_s1 + $0x8] sm:$0xff]  ;;  %v67_v4 = vand.u32 2147483647, %v63_v0  ;;  %v68_v5 = vand.u32 2147483647, %v64_v1 }
   0x3   :  { %v71_v6 = vsub.f32 %v63_v0, %v65_v2  ;;  %v69_v7 = vand.u32 2147483647, %v65_v2  ;;  %v70_v8 = vand.u32 2147483647, %v66_v3  ;;  %v72_v9 = vsub.f32 %v64_v1, %v66_v3 }
   0x4   :  { %vm75_vm0 = vcmp.gt.f32.partialorder %v67_v4, 0.0  ;;  %vm76_vm1 = vcmp.gt.f32.partialorder %v68_v5, 0.0  ;;  %vm77_vm2 = vcmp.le.f32.partialorder %v67_v4, 1.0  ;;  %vm78_vm3 = vcmp.le.f32.partialorder %v68_v5, 1.0 }
   0x5   :  { %vm79_vm4 = vmand %vm75_vm0, %vm77_vm2  ;;  %vm81_vm5 = vcmp.gt.f32.partialorder %v69_v7, 0.0  ;;  %vm82_vm6 = vcmp.gt.f32.partialorder %v70_v8, 0.0  ;;  %v73_v10 = vmul.f32 %v71_v6, %v71_v6  ;;  %vm85_vm8 = vcmp.le.f32.partialorder %v69_v7, 1.0 }
   0x6   :  { %vm80_vm7 = vmand %vm76_vm1, %vm78_vm3  ;;  %v74_v11 = vmul.f32 %v72_v9, %v72_v9  ;;  %vm86_vm10 = vcmp.le.f32.partialorder %v70_v8, 1.0 }
   0x7   :  { %vm83_vm9 = vmand %vm79_vm4, %vm81_vm5 }
   0x8   :  { %vm84_vm11 = vmand %vm80_vm7, %vm82_vm6 }
   0x9   :  { %vm87_vm12 = vmand %vm83_vm9, %vm85_vm8 }
   0xa   :  { %vm88_vm13 = vmand %vm84_vm11, %vm86_vm10  ;;  %v90_v12 = vsel %vm87_vm12, %v73_v10, 0.0  ;;  %v123_v14 = vsel %vm87_vm12, 1.0, %v126_v13 }
   0xb   :  { %v91_v15 = vsel %vm88_vm13, %v74_v11, 0.0  ;;  %v124_v16 = vsel %vm88_vm13, 1.0, %v126_v13 }
   0xc   :  { %v92_v17 = vadd.f32 %v91_v15, %v90_v12  ;;  %v100_v18 = vadd.f32 %v124_v16, %v123_v14 }
   0xe   :  { %94 = vst [vmem:[%s167_s2] sm:$0xff] %v92_v17  ;;  %102 = vst [vmem:[%s168_s3] sm:$0xff] %v100_v18 }

</bundles_post_ra>
